<compile_context>
chip_gen: v7x
topology: tpu7x:2x2x1
jax: 0.10.0
libtpu: 0.0.40
codegen_flags: <defaults>
</compile_context>

<pallas_src>
import jax
import jax.numpy as jnp
from jax import lax
from jax.experimental import pallas as pl
from jax.experimental.pallas import tpu as pltpu


def _round_up(x, m):
    return ((x + m - 1) // m) * m


def _pad2(x, rows, cols):
    return jnp.pad(x, ((0, rows - x.shape[0]), (0, cols - x.shape[1])))


def _cosine_clip_kernel(text_feat_ref, w_text_ref, img_feat_ref, w_img_ref,
                        sims_ref, t_scratch, v_scratch):
    """Fused stand-in encoders (MXU, bf16 in / f32 acc) + cosine similarity epilogue."""
    k = pl.program_id(1)
    nk = pl.num_programs(1)

    @pl.when(k == 0)
    def _init():
        # Tiny text projection: (TB, Dt) @ (Dt, E).  Computed once per batch block
        # and kept resident across the whole Dv reduction.
        t_scratch[...] = jnp.dot(text_feat_ref[...], w_text_ref[...],
                                 preferred_element_type=jnp.float32)
        v_scratch[...] = jnp.zeros_like(v_scratch)

    # Image projection: accumulate (TB, TK) @ (TK, E) over the Dv reduction axis.
    v_scratch[...] += jnp.dot(img_feat_ref[...], w_img_ref[...],
                              preferred_element_type=jnp.float32)

    @pl.when(k == nk - 1)
    def _epilogue():
        t = t_scratch[...]
        v = v_scratch[...]
        dots = jnp.sum(t * v, axis=-1, keepdims=True)          # (TB, 1)
        nt2 = jnp.sum(t * t, axis=-1, keepdims=True)
        nv2 = jnp.sum(v * v, axis=-1, keepdims=True)
        # cosine_similarity with torch's eps:  dot / max(||t||*||v||, 1e-8)
        inv = lax.rsqrt(jnp.maximum(nt2 * nv2, 1e-16))          # EUP
        sims_ref[...] = (dots * inv).astype(sims_ref.dtype)


def cosine_clip_sims(text_feat, fake_imgs, w_text, w_img):
    """Per-sample cosine similarity between stand-in text/image encodings.

    text_feat: (B, Dt) f32.  fake_imgs: (B, C, H, W) f32 (NCHW, PyTorch layout).
    w_text: (Dt, E).  w_img: (C*H*W, E).  Returns sims: (B,) f32.
    """
    B, Dt = text_feat.shape
    Dv = fake_imgs.shape[1] * fake_imgs.shape[2] * fake_imgs.shape[3]
    E = w_text.shape[1]

    # Glue: flatten NCHW image to one feature row per sample (stands in for CLIP
    # preprocessing + patchification).
    img_feat = fake_imgs.reshape(B, Dv)

    # Tile sizes: lane dims padded to 128 multiples, batch padded to 16/128 rows,
    # Dv streamed in TK-wide chunks.  Working set stays far below scoped VMEM.
    TB = min(128, _round_up(max(B, 1), 16))
    B_pad = _round_up(B, TB)
    Dt_pad = _round_up(Dt, 128)
    E_pad = _round_up(E, 128)
    TK = 512 if Dv >= 512 else _round_up(Dv, 128)
    Dv_pad = _round_up(Dv, TK)

    # bf16 matmul operands (MXU-native); zero padding contributes nothing.
    tf_b = _pad2(text_feat.astype(jnp.float32), B_pad, Dt_pad).astype(jnp.bfloat16)
    if_b = _pad2(img_feat.astype(jnp.float32), B_pad, Dv_pad).astype(jnp.bfloat16)
    wt_b = _pad2(w_text.astype(jnp.float32), Dt_pad, E_pad).astype(jnp.bfloat16)
    wi_b = _pad2(w_img.astype(jnp.float32), Dv_pad, E_pad).astype(jnp.bfloat16)

    grid_b = B_pad // TB
    grid_k = Dv_pad // TK

    sims_pad = pl.pallas_call(
        _cosine_clip_kernel,
        out_shape=jax.ShapeDtypeStruct((B_pad, 1), jnp.float32),
        grid_spec=pltpu.PrefetchScalarGridSpec(
            num_scalar_prefetch=0,
            grid=(grid_b, grid_k),
            in_specs=[
                pl.BlockSpec((TB, Dt_pad), lambda b, k: (b, 0)),     # text features
                pl.BlockSpec((Dt_pad, E_pad), lambda b, k: (0, 0)),  # w_text (resident)
                pl.BlockSpec((TB, TK), lambda b, k: (b, k)),         # img features stream
                pl.BlockSpec((TK, E_pad), lambda b, k: (k, 0)),      # w_img stream
            ],
            out_specs=pl.BlockSpec((TB, 1), lambda b, k: (b, 0)),    # per-sample sims
            scratch_shapes=[
                pltpu.VMEM((TB, E_pad), jnp.float32),   # text projection (resident)
                pltpu.VMEM((TB, E_pad), jnp.float32),   # image projection accumulator
            ],
        ),
        compiler_params=pltpu.CompilerParams(
            dimension_semantics=("parallel", "arbitrary"),
            vmem_limit_bytes=32 * 1024 * 1024,
        ),
    )(tf_b, wt_b, if_b, wi_b)

    return sims_pad[:B, 0]


def cosine_clip_loss(text_feat, fake_imgs, w_text, w_img):
    """CosineClipLoss.forward: negative mean cosine similarity (scalar)."""
    sims = cosine_clip_sims(text_feat, fake_imgs, w_text, w_img)
    return -jnp.mean(sims)


if __name__ == "__main__":
    # Small, deterministic example shapes.
    B, C, H, W = 2, 3, 16, 16      # fake_imgs: NCHW like PyTorch
    Dt = 32                        # synthetic text-token feature width
    E = 256                        # synthetic CLIP embedding dim (lane-dense)

    key = jax.random.PRNGKey(0)
    k_txt, k_img, k_wt, k_wi = jax.random.split(key, 4)

    text_feat = jax.random.normal(k_txt, (B, Dt), dtype=jnp.float32)
    fake_imgs = jax.random.uniform(k_img, (B, C, H, W), dtype=jnp.float32)

    # Deterministic synthetic encoder weights (stand-ins for clip_model params).
    Dv = C * H * W
    w_text = jax.random.normal(k_wt, (Dt, E), dtype=jnp.float32) / jnp.sqrt(Dt)
    w_img = jax.random.normal(k_wi, (Dv, E), dtype=jnp.float32) / jnp.sqrt(Dv)

    sims = cosine_clip_sims(text_feat, fake_imgs, w_text, w_img)
    loss = -jnp.mean(sims)
    jax.block_until_ready((sims, loss))

    # Pure-JAX reference (same bf16 operand rounding, f32 accumulation).
    tf32 = text_feat.astype(jnp.bfloat16).astype(jnp.float32)
    if32 = fake_imgs.reshape(B, Dv).astype(jnp.bfloat16).astype(jnp.float32)
    wt32 = w_text.astype(jnp.bfloat16).astype(jnp.float32)
    wi32 = w_img.astype(jnp.bfloat16).astype(jnp.float32)
    t_ref = tf32 @ wt32
    v_ref = if32 @ wi32
    dots_ref = jnp.sum(t_ref * v_ref, axis=-1)
    den_ref = jnp.maximum(jnp.linalg.norm(t_ref, axis=-1)
                          * jnp.linalg.norm(v_ref, axis=-1), 1e-8)
    sims_ref = dots_ref / den_ref
    loss_ref = -jnp.mean(sims_ref)

    assert jnp.allclose(sims, sims_ref, atol=1e-3, rtol=1e-3), (sims, sims_ref)
    assert jnp.allclose(loss, loss_ref, atol=1e-3, rtol=1e-3), (loss, loss_ref)

    print("KERNEL_OK")
</pallas_src>

<mosaic_0001>
module attributes {stable_mosaic.version = 11 : i64} {
  func.func @_cosine_clip_kernel(%arg0: i32, %arg1: i32, %arg2: memref<16x128xbf16, #tpu.memory_space<vmem>>, %arg3: memref<128x256xbf16, #tpu.memory_space<vmem>>, %arg4: memref<16x512xbf16, #tpu.memory_space<vmem>>, %arg5: memref<512x256xbf16, #tpu.memory_space<vmem>>, %arg6: memref<16x1xf32, #tpu.memory_space<vmem>>, %arg7: memref<16x256xf32, #tpu.memory_space<vmem>>, %arg8: memref<16x256xf32, #tpu.memory_space<vmem>>) attributes {dimension_semantics = [#tpu.dimension_semantics<parallel>, #tpu.dimension_semantics<arbitrary>], iteration_bounds = array<i64: 1, 2>, scalar_prefetch = 0 : i64, scratch_operands = 2 : i64, tpu.core_type = #tpu.core_type<tc>, window_params = [{transform_indices = @transform_0, window_bounds = array<i64: 16, 128>}, {pipeline_mode = #tpu.pipeline_mode<synchronous>, transform_indices = @transform_1, window_bounds = array<i64: 128, 256>}, {transform_indices = @transform_2, window_bounds = array<i64: 16, 512>}, {transform_indices = @transform_3, window_bounds = array<i64: 512, 256>}, {transform_indices = @transform_4, window_bounds = array<i64: 16, 1>}]} {
    %c0_i32 = arith.constant 0 : i32
    %0 = arith.cmpi eq, %arg1, %c0_i32 : i32
    %1 = arith.extui %0 : i1 to i32
    %c0_i32_0 = arith.constant 0 : i32
    %2 = arith.cmpi ne, %1, %c0_i32_0 : i32
    scf.if %2 {
      %c0_9 = arith.constant 0 : index
      %c0_10 = arith.constant 0 : index
      %12 = vector.load %arg2[%c0_9, %c0_10] : memref<16x128xbf16, #tpu.memory_space<vmem>>, vector<16x128xbf16>
      %c0_11 = arith.constant 0 : index
      %c0_12 = arith.constant 0 : index
      %13 = vector.load %arg3[%c0_11, %c0_12] : memref<128x256xbf16, #tpu.memory_space<vmem>>, vector<128x256xbf16>
      %cst_13 = arith.constant dense<0.000000e+00> : vector<16x256xf32>
      %14 = tpu.matmul %12, %13, %cst_13 {dimension_numbers = #tpu.dot_dimension_numbers<[1], [0], [0], [1], [0, 0, 1, 1], [], []>} : vector<16x128xbf16>, vector<128x256xbf16>, vector<16x256xf32> -> vector<16x256xf32>
      %c0_14 = arith.constant 0 : index
      %c0_15 = arith.constant 0 : index
      %15 = vector.load %arg7[%c0_14, %c0_15] : memref<16x256xf32, #tpu.memory_space<vmem>>, vector<16x256xf32>
      tpu.vector_store %arg7[%c0_14, %c0_15], %14 {strides = array<i32>} : memref<16x256xf32, #tpu.memory_space<vmem>>, vector<16x256xf32>,
      %cst_16 = arith.constant 0.000000e+00 : f32
      %16 = vector.broadcast %cst_16 : f32 to vector<16x256xf32>
      %c0_17 = arith.constant 0 : index
      %c0_18 = arith.constant 0 : index
      %17 = vector.load %arg8[%c0_17, %c0_18] : memref<16x256xf32, #tpu.memory_space<vmem>>, vector<16x256xf32>
      tpu.vector_store %arg8[%c0_17, %c0_18], %16 {strides = array<i32>} : memref<16x256xf32, #tpu.memory_space<vmem>>, vector<16x256xf32>,
    } else {
    }
    %c0 = arith.constant 0 : index
    %c0_1 = arith.constant 0 : index
    %3 = vector.load %arg8[%c0, %c0_1] : memref<16x256xf32, #tpu.memory_space<vmem>>, vector<16x256xf32>
    %c0_2 = arith.constant 0 : index
    %c0_3 = arith.constant 0 : index
    %4 = vector.load %arg4[%c0_2, %c0_3] : memref<16x512xbf16, #tpu.memory_space<vmem>>, vector<16x512xbf16>
    %c0_4 = arith.constant 0 : index
    %c0_5 = arith.constant 0 : index
    %5 = vector.load %arg5[%c0_4, %c0_5] : memref<512x256xbf16, #tpu.memory_space<vmem>>, vector<512x256xbf16>
    %cst = arith.constant dense<0.000000e+00> : vector<16x256xf32>
    %6 = tpu.matmul %4, %5, %cst {dimension_numbers = #tpu.dot_dimension_numbers<[1], [0], [0], [1], [0, 0, 1, 1], [], []>} : vector<16x512xbf16>, vector<512x256xbf16>, vector<16x256xf32> -> vector<16x256xf32>
    %7 = arith.addf %3, %6 : vector<16x256xf32>
    %c0_6 = arith.constant 0 : index
    %c0_7 = arith.constant 0 : index
    %8 = vector.load %arg8[%c0_6, %c0_7] : memref<16x256xf32, #tpu.memory_space<vmem>>, vector<16x256xf32>
    tpu.vector_store %arg8[%c0_6, %c0_7], %7 {strides = array<i32>} : memref<16x256xf32, #tpu.memory_space<vmem>>, vector<16x256xf32>,
    %c1_i32 = arith.constant 1 : i32
    %9 = arith.cmpi eq, %arg1, %c1_i32 : i32
    %10 = arith.extui %9 : i1 to i32
    %c0_i32_8 = arith.constant 0 : i32
    %11 = arith.cmpi ne, %10, %c0_i32_8 : i32
    scf.if %11 {
      %c0_9 = arith.constant 0 : index
      %c0_10 = arith.constant 0 : index
      %12 = vector.load %arg7[%c0_9, %c0_10] : memref<16x256xf32, #tpu.memory_space<vmem>>, vector<16x256xf32>
      %c0_11 = arith.constant 0 : index
      %c0_12 = arith.constant 0 : index
      %13 = vector.load %arg8[%c0_11, %c0_12] : memref<16x256xf32, #tpu.memory_space<vmem>>, vector<16x256xf32>
      %14 = arith.mulf %12, %13 : vector<16x256xf32>
      %cst_13 = arith.constant dense<0.000000e+00> : vector<16xf32>
      %15 = vector.multi_reduction <add>, %14, %cst_13 [1] : vector<16x256xf32> to vector<16xf32>
      %16 = vector.shape_cast %15 : vector<16xf32> to vector<16x1xf32>
      %17 = arith.mulf %12, %12 : vector<16x256xf32>
      %cst_14 = arith.constant dense<0.000000e+00> : vector<16xf32>
      %18 = vector.multi_reduction <add>, %17, %cst_14 [1] : vector<16x256xf32> to vector<16xf32>
      %19 = vector.shape_cast %18 : vector<16xf32> to vector<16x1xf32>
      %20 = arith.mulf %13, %13 : vector<16x256xf32>
      %cst_15 = arith.constant dense<0.000000e+00> : vector<16xf32>
      %21 = vector.multi_reduction <add>, %20, %cst_15 [1] : vector<16x256xf32> to vector<16xf32>
      %22 = vector.shape_cast %21 : vector<16xf32> to vector<16x1xf32>
      %23 = arith.mulf %19, %22 : vector<16x1xf32>
      %cst_16 = arith.constant 1.000000e-16 : f32
      %24 = vector.broadcast %cst_16 : f32 to vector<16x1xf32>
      %25 = arith.maximumf %23, %24 : vector<16x1xf32>
      %26 = math.rsqrt %25 : vector<16x1xf32>
      %27 = arith.mulf %16, %26 : vector<16x1xf32>
      %c0_17 = arith.constant 0 : index
      %c0_18 = arith.constant 0 : index
      %28 = vector.load %arg6[%c0_17, %c0_18] : memref<16x1xf32, #tpu.memory_space<vmem>>, vector<16x1xf32>
      tpu.vector_store %arg6[%c0_17, %c0_18], %27 {strides = array<i32>} : memref<16x1xf32, #tpu.memory_space<vmem>>, vector<16x1xf32>,
    } else {
    }
    return
  }
  func.func @transform_0(%arg0: i32, %arg1: i32) -> (i32, i32) {
    %c0_i32 = arith.constant 0 : i32
    %c0_i32_0 = arith.constant 0 : i32
    return %arg0, %c0_i32 : i32, i32
  }
  func.func @transform_1(%arg0: i32, %arg1: i32) -> (i32, i32) {
    %c0_i32 = arith.constant 0 : i32
    %c0_i32_0 = arith.constant 0 : i32
    %c0_i32_1 = arith.constant 0 : i32
    return %c0_i32, %c0_i32_0 : i32, i32
  }
  func.func @transform_2(%arg0: i32, %arg1: i32) -> (i32, i32) {
    %c0_i32 = arith.constant 0 : i32
    return %arg0, %arg1 : i32, i32
  }
  func.func @transform_3(%arg0: i32, %arg1: i32) -> (i32, i32) {
    %c0_i32 = arith.constant 0 : i32
    %c0_i32_0 = arith.constant 0 : i32
    return %arg1, %c0_i32 : i32, i32
  }
  func.func @transform_4(%arg0: i32, %arg1: i32) -> (i32, i32) {
    %c0_i32 = arith.constant 0 : i32
    %c0_i32_0 = arith.constant 0 : i32
    return %arg0, %c0_i32 : i32, i32
  }
}

</mosaic_0001>

<bundles_post_ra>
// kernel: tpu_custom_call.1
= control target key start
LH: loop header
LB: loop body
LE: loop exit
PB: predicated region body
PF: predicated region fallthrough
CT: control target
= control target key end

     0   :  { %s2011_s0 = inlined_call_operand.hbm [shape: bf16[16,128], index: 0, kind: input, shape index: {}]   ;;  %s2012_s1 = inlined_call_operand.hbm [shape: bf16[128,256], index: 1, kind: input, shape index: {}]   ;;  %s2013_s2 = inlined_call_operand.hbm [shape: bf16[16,1024], index: 2, kind: input, shape index: {}]   ;;  %s2014_s3 = inlined_call_operand.hbm [shape: bf16[1024,256], index: 3, kind: input, shape index: {}]   ;;  %s2015_s4 = inlined_call_operand.vmem [shape: f32[16,1], index: 4, kind: output, shape index: {}]  }
   0x1   :  { %2026 = sst [smem:[#allocation14_spill]] %s2011_s0 }
   0x2   :  { %2027 = sst [smem:[#allocation15_spill]] %s2013_s2 }
   0x3   :  { %9 = vsyncpa [#allocation5], 0 }
   0x4   :  { %10 = vsyncpa [#allocation7], 0  ;;  %s1699_s15 = smov 0   ;;  %s1701_s16 = smov 0  }
   0x5   :  { %s1703_s17 = smov 0   ;;  %s1705_s18 = smov 0  }
   0x6   :  { %s1707_s19 = smov 0   ;;  %s1709_s20 = smov 0  }
   0x7 LB: > { %s2022_s21 = sadd.s32 4294967295, %s1659_s20   ;;  %s84_s22 = sadd.s32 1, %s1647_s17  ;;  %s1659_s20 = sphi %s1709_s20, %s16_s20   ;;  %s1655_s19 = sphi %s1707_s19, %s2051_s19   ;;  %s1651_s18 = sphi %s1705_s18, %s2050_s18   ;;  %s1647_s17 = sphi %s1703_s17, %s2049_s17   ;;  %s1643_s16 = sphi %s1701_s16, %s2048_s16   ;;  %s1639_s15 = sphi %s1699_s15, %s2047_s15  }
   0x8   : > { %p91_p0 = scmp.ne.s32.totalorder %s1647_s17, %s1643_s16  ;;  %p92_p1 = scmp.eq.s32.totalorder %s1659_s20, 0 }
   0x9   : > { %p97_p2 = scmp.ne.s32.totalorder %s1643_s16, %s1639_s15  ;;  %p1735_p3 = scmp.eq.s32.totalorder %s2022_s21, 0 }
   0xa   : > { %p93_p4 = por %p92_p1, %p91_p0  ;;  %p1150_p5 = scmp.ge.s32.totalorder %s1659_s20, 1 }
   0xb   : > { %s2028_s23 = scalar_select %p1735_p3, 1, 0 }
   0xc   : > { %p1742_p6 = por %p1735_p3, %p97_p2  ;;  %p160_p7 = scmp.lt.s32.totalorder %s1659_s20, 3 }
   0xd   : > { %s1661_s26 = smov [#allocation4]   ;;  %p1292_p10 = scmp.lt.s32.totalorder %s1659_s20, 2 }
   0xe   : > { %s2029_s24 = scalar_select %p1742_p6, 1, 0 }
   0xf   : > { %p1747_p8 = pnand %p1150_p5, %p160_p7  ;;  %s175_s27 = sshll.u32 %s1661_s26, 4  ;;  %s176_s27 = int_to_ptr.vmem [resolvable:$true] %s175_s27 }
  0x10   : > { %p1760_p12 = pnand %p1292_p10, %p93_p4  ;;  %s25_s30 = sadd.s32 1, %s1655_s19 }
  0x11   : > { %s2030_s25 = scalar_select %p1747_p8, 1, 0 }
  0x12   : > { %p1276_p9 = pneg %p1747_p8  ;;  %s2033_s0 = sld [smem:[#allocation14_spill]] }
  0x13   : > { %s2032_s29 = scalar_select %p1760_p12, 1, 0 }
  0x14   : > { %p1756_p11 = pnand %p1276_p9, %p1735_p3 }
  0x16   : > { %p2021_p0 = pneg %p1756_p11 }
  0x18   : > { %s1485_s7 = scalar_lea.hbm %s2033_s0, 128 }
  0x19   : > { %p1486_p13 = scmp.ne.s32.totalorder %s2033_s0, %s1485_s7  ;;  %p1492_p4 = scmp.lt.u32.totalorder %s1485_s7, %s2033_s0 }
  0x1b   : > { %p1488_p1 = pnand %p2021_p0, %p1486_p13 }
  0x1d   : > { %p1489_p2 = pneg %p1488_p1 }
  0x1f   : > { %p1494_p5 = pnand %p1492_p4, %p1489_p2 }
  0x21   : > { %1497 = shalt.err (!%p1494_p5)
}
  0x22   : > { %s1498_s12 = scalar_lea.vmem %s176_s27, 128  ;;  %p1506_p6 = scmp.lt.s32.totalorder %s176_s27, %s176_s27 }
  0x23   : > { %p1499_p7 = scmp.ne.s32.totalorder %s176_s27, %s1498_s12  ;;  %p1507_p3 = scmp.lt.s32.totalorder %s1498_s12, %s1498_s12 }
  0x25   : > { %p1501_p9 = pnand %p1499_p7, %p2021_p0  ;;  %p1508_p8 = por %p1507_p3, %p1506_p6 }
  0x27   : > { %p1502_p10 = pneg %p1501_p9 }
  0x29   : > { %p1509_p12 = pnand %p1508_p8, %p1502_p10 }
  0x2b   : > { %1512 = shalt.err (!%p1509_p12)
}
  0x2c   : > { %s1662_s13 = smov 64   ;;  %s1663_s14 = smov 4  }
  0x2d   : > { %1279 = dma.hbm_to_vmem [thread:$0]  (!%p1756_p11), %s2033_s0, 128, %s176_s27, [#allocation5], %s1662_s13, %s1662_s13, %s1663_s14  }
  0x2e   : > { %p26_p13 = scmp.ge.s32.totalorder %s25_s30, 2  ;;  %s202_s5 = sand.u32 1, %s1659_s20  }
  0x2f   : > { %s204_s6 = sand.u32 1, %s1647_s17   ;;  %s1257_s9 = sshll.u32 %s1655_s19, 8 }
  0x30   : > { %s2053_s30 = smov (%p26_p13, %s25_s30), 0  ;;  %s1154_s7 = sshll.u32 %s204_s6, 5 }
  0x31   : > { %2034 = sst [smem:[#allocation13_spill]] %s2053_s30  ;;  %s80_s8 = ssub.s32 %s1655_s19, %s2053_s30 }
  0x32   : > { %p82_p3 = scmp.eq.s32.totalorder %s80_s8, 0  ;;  %s2035_s2 = sld [smem:[#allocation15_spill]] }
  0x33   : > { %s206_s27 = scalar_lea.vmem [#allocation8], %s1154_s7  ;;  %s1808_s15 = scalar_lea.sflag [#allocation5], %s202_s5 }
  0x34   : > { %s216_s13 = sshll.u32 %s206_s27, 4  ;;  %p2036_p8 = scmp.ne.s32.totalorder %s2032_s29, 0  ;;  %s1806_s13 = int_to_ptr.vmem [resolvable:$true] %s216_s13 }
  0x35   : > { %s1804_s14 = scalar_select %p82_p3, %s1647_s17, %s84_s22  }
  0x36   : > { %p2024_p12 = pneg %p2036_p8 }
  0x38   : > { %s1799_s12 = scalar_lea.hbm %s2035_s2, %s1257_s9  ;;  %s1518_s7 = scalar_lea.hbm %s2035_s2, 1024 }
  0x39   : > { %s1513_s26 = scalar_lea.hbm %s1799_s12, 512  ;;  %p1519_p4 = scmp.lt.u32.totalorder %s1799_s12, %s2035_s2 }
  0x3a   : > { %p1514_p6 = scmp.ne.s32.totalorder %s1799_s12, %s1513_s26  ;;  %p1520_p5 = scmp.lt.u32.totalorder %s1518_s7, %s1513_s26 }
  0x3b   : > { %p1522_p9 = scmp.lt.u32.totalorder %s1513_s26, %s1799_s12 }
  0x3c   : > { %p1516_p1 = pnand %p2024_p12, %p1514_p6  ;;  %p1521_p7 = por %p1520_p5, %p1519_p4 }
  0x3e   : > { %p1517_p2 = pneg %p1516_p1  ;;  %p1523_p10 = por %p1522_p9, %p1521_p7 }
  0x40   : > { %p1524_p13 = pnand %p1523_p10, %p1517_p2 }
  0x42   : > { %1527 = shalt.err (!%p1524_p13)
}
  0x43   : > { %s1528_s22 = scalar_lea.vmem %s1806_s13, 512  ;;  %s1664_s5 = smov [#allocation8]  }
  0x44   : > { %p1529_p3 = scmp.ne.s32.totalorder %s1806_s13, %s1528_s22  ;;  %s1533_s27 = sshll.u32 %s1664_s5, 4  ;;  %s1534_s27 = int_to_ptr.vmem [resolvable:$false] %s1533_s27 }
  0x45   : > { %s1535_s8 = scalar_lea.vmem %s1534_s27, 1024  ;;  %p1536_p0 = scmp.lt.s32.totalorder %s1806_s13, %s1534_s27 }
  0x46   : > { %p1531_p6 = pnand %p1529_p3, %p2024_p12  ;;  %p1537_p4 = scmp.lt.s32.totalorder %s1535_s8, %s1528_s22 }
  0x48   : > { %p1532_p1 = pneg %p1531_p6  ;;  %p1538_p5 = por %p1537_p4, %p1536_p0 }
  0x4a   : > { %p1539_p7 = pnand %p1538_p5, %p1532_p1 }
  0x4c   : > { %1542 = shalt.err (!%p1539_p7)
}
  0x4d   : > { %s1665_s26 = smov 512   ;;  %s1666_s9 = smov 256  }
  0x4e   : > { %s1667_s7 = smov 16   ;;  %s1668_s10 = smov [#allocation6]  }
  0x4f   : > { %1286 = dma.hbm_to_vmem [thread:$0]  (!%p2036_p8), %s1799_s12, 512, %s1806_s13, %s1808_s15, %s1665_s26, %s1666_s9, %s1667_s7  }
  0x50   : > { %s188_s11 = sshll.u32 %s1668_s10, 4  ;;  %s1157_s5 = sshll.u32 %s204_s6, 9  ;;  %s189_s11 = int_to_ptr.vmem [resolvable:$true] %s188_s11 }
  0x51   : > { %s1543_s8 = scalar_lea.hbm %s2012_s1, 2048  ;;  %p2037_p2 = pneg %p1756_p11 }
  0x52   : > { %p1544_p0 = scmp.ne.s32.totalorder %s2012_s1, %s1543_s8  ;;  %p1550_p13 = scmp.lt.u32.totalorder %s1543_s8, %s2012_s1 }
  0x54   : > { %p1546_p9 = pnand %p1544_p0, %p2037_p2 }
  0x56   : > { %p1547_p10 = pneg %p1546_p9 }
  0x58   : > { %p1552_p3 = pnand %p1550_p13, %p1547_p10 }
  0x5a   : > { %1555 = shalt.err (!%p1552_p3)
}
  0x5b   : > { %s1556_s12 = scalar_lea.vmem %s189_s11, 2048  ;;  %p2038_p1 = pmov %p2037_p2 }
  0x5c   : > { %p1557_p6 = scmp.ne.s32.totalorder %s189_s11, %s1556_s12  ;;  %p1564_p7 = scmp.lt.s32.totalorder %s189_s11, %s189_s11 }
  0x5d   : > { %p1565_p12 = scmp.lt.s32.totalorder %s1556_s12, %s1556_s12 }
  0x5e   : > { %p1559_p4 = pnand %p1557_p6, %p2038_p1 }
  0x5f   : > { %p1566_p8 = por %p1565_p12, %p1564_p7 }
  0x60   : > { %p1560_p5 = pneg %p1559_p4 }
  0x62   : > { %p1567_p0 = pnand %p1566_p8, %p1560_p5 }
  0x64   : > { %1570 = shalt.err (!%p1567_p0)
}
  0x65   : > { %s1669_s0 = smov 128   ;;  %s1670_s2 = smov 8  }
  0x66   : > { %1282 = dma.hbm_to_vmem [thread:$0]  (!%p1756_p11), %s2012_s1, 2048, %s189_s11, [#allocation7], %s1669_s0, %s1669_s0, %s1670_s2  }
  0x67   : > { %s1259_s6 = sshll.u32 %s1655_s19, 13  ;;  %s230_s7 = scalar_lea.vmem [#allocation9], %s1157_s5 }
  0x68   : > { %s1865_s9 = scalar_lea.hbm %s2014_s3, %s1259_s6  ;;  %s238_s10 = sshll.u32 %s230_s7, 4  ;;  %s1867_s10 = int_to_ptr.vmem [resolvable:$true] %s238_s10 }
  0x69   : > { %s1571_s28 = scalar_lea.hbm %s1865_s9, 8192  ;;  %p2039_p12 = scmp.ne.s32.totalorder %s2032_s29, 0 }
  0x6a   : > { %p1572_p8 = scmp.ne.s32.totalorder %s1865_s9, %s1571_s28  ;;  %s1576_s27 = scalar_lea.hbm %s2014_s3, 16384 }
  0x6b   : > { %p2040_p2 = pneg %p2039_p12  ;;  %p1577_p10 = scmp.lt.u32.totalorder %s1865_s9, %s2014_s3 }
  0x6c   : > { %p1578_p13 = scmp.lt.u32.totalorder %s1576_s27, %s1571_s28  ;;  %p1580_p6 = scmp.lt.u32.totalorder %s1571_s28, %s1865_s9 }
  0x6d   : > { %p1574_p9 = pnand %p1572_p8, %p2040_p2 }
  0x6e   : > { %p1579_p3 = por %p1578_p13, %p1577_p10 }
  0x6f   : > { %p1575_p11 = pneg %p1574_p9 }
  0x70   : > { %p1581_p1 = por %p1580_p6, %p1579_p3 }
  0x72   : > { %p1582_p4 = pnand %p1581_p1, %p1575_p11 }
  0x74   : > { %1585 = shalt.err (!%p1582_p4)
}
  0x75   : > { %s1586_s5 = scalar_lea.vmem %s1867_s10, 8192  ;;  %p2041_p7 = pmov %p2040_p2 }
  0x76   : > { %p1587_p5 = scmp.ne.s32.totalorder %s1867_s10, %s1586_s5  ;;  %s1671_s21 = smov [#allocation9]  }
  0x77   : > { %s1591_s30 = sshll.u32 %s1671_s21, 4  ;;  %s1592_s30 = int_to_ptr.vmem [resolvable:$false] %s1591_s30 }
  0x78   : > { %p1589_p0 = pnand %p1587_p5, %p2041_p7  ;;  %s1593_s6 = scalar_lea.vmem %s1592_s30, 16384 }
  0x79   : > { %p1594_p2 = scmp.lt.s32.totalorder %s1867_s10, %s1592_s30  ;;  %p1595_p9 = scmp.lt.s32.totalorder %s1593_s6, %s1586_s5 }
  0x7a   : > { %p1590_p8 = pneg %p1589_p0 }
  0x7b   : > { %p1596_p10 = por %p1595_p9, %p1594_p2 }
  0x7d   : > { %p1597_p13 = pnand %p1596_p10, %p1590_p8 }
  0x7f   : > { %1600 = shalt.err (!%p1597_p13)
}
  0x80   : > { %1289 = dma.hbm_to_vmem [thread:$0]  (!%p2039_p12), %s1865_s9, 8192, %s1867_s10, %s1808_s15, %s1669_s0, %s1669_s0, %s1670_s2  }
  0x81   : > { %p2042_p11 = scmp.ne.s32.totalorder %s2030_s25, 0 }
  0x82   : > { %p2043_p3 = scmp.ne.s32.totalorder (!%p2042_p11), %s2028_s23, 0 }
  0x83   : > { %250 = sbr.rel (%p2042_p11) target bundleno = 856 (0x358), region = 36 }
  0x8a   : > { %1626 = dma.done.wait (%p2043_p3), [#allocation5], 128  }
  0x8b   : > { %1628 = vsyncadd (%p2043_p3), [#allocation5], 4294967168 }
  0x8c   : > { %1630 = dma.done.wait (%p2043_p3), [#allocation7], 2048  }
  0x8d   : > { %1632 = vsyncadd (%p2043_p3), [#allocation7], 4294965248  ;;  %s2044_s29 = sadd.s32 4294967295, %s1659_s20   ;;  %s262_s0 = sand.u32 1, %s1643_s16  }
  0x8e   : > { %s260_s15 = sand.u32 1, %s2044_s29   ;;  %s1164_s25 = sshll.u32 %s262_s0, 5 }
  0x8f   : > { %s261_s2 = scalar_lea.sflag [#allocation5], %s260_s15  ;;  %s1909_s13 = scalar_lea.vmem [#allocation8], %s1164_s25 }
  0x90   : > { %p2045_p12 = scmp.ne.s32.totalorder %s2029_s24, 0 }
  0x92   : > { %1634 = dma.done.wait (%p2045_p12), %s261_s2, 8704  }
  0x93   : > { %1636 = vsyncadd (%p2045_p12), %s261_s2, 4294958592  ;;  %s1165_s26 = sshll.u32 %s262_s0, 9  ;;  %p1166_p6 = scmp.ne.s32.totalorder %s1651_s18, 0 }
  0x94   : > { %s1915_s9 = scalar_lea.vmem [#allocation9], %s1165_s26  ;;  %v1354_v0 = vld [vmem:[#allocation6 + $0x4] ss:$8 sps:$4 sm:$0xff] (!%p1166_p6)   ;;  %v1356_v1 = vld [vmem:[#allocation6] ss:$8 sps:$4 sm:$0xff] (!%p1166_p6)   ;;  %v1672_v2 = vmov (!%p1166_p6), 0  }
  0x95   : > { %317 = sbr.rel (%p1166_p6) target bundleno = 397 (0x18d), region = 56  ;;  %454 = vmatprep.mubr.bf16.mxu0 (!%p1166_p6), %v1672_v2  ;;  %422 = vmatprep.subr.bf16.mxu0 (!%p1166_p6), %v1354_v0  ;;  %v1357_v3 = vld [vmem:[#allocation6 + $0x14] ss:$8 sps:$4 sm:$0xff] (!%p1166_p6)   ;;  %v1359_v4 = vld [vmem:[#allocation6 + $0x10] ss:$8 sps:$4 sm:$0xff] (!%p1166_p6)   ;;  %v1673_v18 = vmov (!%p1166_p6), 0.0  }
  0x96   : > { %423 = vmatpush1.bf16.msra.mxu0 (!%p1166_p6), %v1356_v1  ;;  %v1360_v5 = vld [vmem:[#allocation6 + $0x24] ss:$8 sps:$4 sm:$0xff] (!%p1166_p6)   ;;  %v1362_v6 = vld [vmem:[#allocation6 + $0x20] ss:$8 sps:$4 sm:$0xff] (!%p1166_p6)   ;;  %v1363_v7 = vld [vmem:[#allocation6 + $0x34] ss:$8 sps:$4 sm:$0xff] (!%p1166_p6)  }
  0x97   : > { %424 = vmatprep.subr.bf16.mxu0 (!%p1166_p6), %v1357_v3  ;;  %v1365_v8 = vld [vmem:[#allocation6 + $0x30] ss:$8 sps:$4 sm:$0xff] (!%p1166_p6)   ;;  %v1366_v9 = vld [vmem:[#allocation6 + $0x44] ss:$8 sps:$4 sm:$0xff] (!%p1166_p6)   ;;  %v1368_v10 = vld [vmem:[#allocation6 + $0x40] ss:$8 sps:$4 sm:$0xff] (!%p1166_p6)  }
  0x98   : > { %v1369_v11 = vld [vmem:[#allocation6 + $0x54] ss:$8 sps:$4 sm:$0xff] (!%p1166_p6)   ;;  %v1371_v12 = vld [vmem:[#allocation6 + $0x50] ss:$8 sps:$4 sm:$0xff] (!%p1166_p6)   ;;  %v1372_v13 = vld [vmem:[#allocation6 + $0x64] ss:$8 sps:$4 sm:$0xff] (!%p1166_p6)  }
  0x99   : > { %v1374_v14 = vld [vmem:[#allocation6 + $0x60] ss:$8 sps:$4 sm:$0xff] (!%p1166_p6)   ;;  %v1375_v15 = vld [vmem:[#allocation6 + $0x74] ss:$8 sps:$4 sm:$0xff] (!%p1166_p6)   ;;  %v1377_v16 = vld [vmem:[#allocation6 + $0x70] ss:$8 sps:$4 sm:$0xff] (!%p1166_p6)  }
  0x9a   : > { %425 = vmatpush1.bf16.msra.mxu0 (!%p1166_p6), %v1359_v4  ;;  %v1378_v17 = vld [vmem:[#allocation4] sm:$0xff] (!%p1166_p6)   ;;  %469 = vst [vmem:[#allocation3] sm:$0xff] (!%p1166_p6), %v1673_v18  ;;  %470 = vst [vmem:[#allocation3 + $0x8] sm:$0xff] (!%p1166_p6), %v1673_v18 }
  0x9b   : > { %426 = vmatprep.subr.bf16.mxu0 (!%p1166_p6), %v1360_v5  ;;  %471 = vst [vmem:[#allocation3 + $0x10] sm:$0xff] (!%p1166_p6), %v1673_v18  ;;  %472 = vst [vmem:[#allocation3 + $0x18] sm:$0xff] (!%p1166_p6), %v1673_v18 }
  0x9e   : > { %427 = vmatpush1.bf16.msra.mxu0 %v1362_v6 }
  0x9f   : > { %428 = vmatprep.subr.bf16.mxu0 %v1363_v7 }
  0xa2   : > { %429 = vmatpush1.bf16.msra.mxu0 %v1365_v8 }
  0xa3   : > { %430 = vmatprep.subr.bf16.mxu0 %v1366_v9 }
  0xa6   : > { %431 = vmatpush1.bf16.msra.mxu0 %v1368_v10 }
  0xa7   : > { %432 = vmatprep.subr.bf16.mxu0 %v1369_v11 }
  0xaa   : > { %433 = vmatpush1.bf16.msra.mxu0 %v1371_v12 }
  0xab   : > { %434 = vmatprep.subr.bf16.mxu0 %v1372_v13 }
  0xae   : > { %435 = vmatpush1.bf16.msra.mxu0 %v1374_v14 }
  0xaf   : > { %436 = vmatprep.subr.bf16.mxu0 %v1375_v15 }
  0xb2   : > { %437 = vmatpush1.bf16.msra.mxu0 %v1377_v16 }
  0xb5   : > { %455 = vmatmul.mubr.bf16.vlgmr.msra.gmra.mrb[0].mxu0 %v1378_v17 }
 0x188   : > { %v456_v19 = vpop.f32.mrb[0].mxu0 }
 0x189   : > { %465 = vst [vmem:[#allocation2] sm:$0xff] %v456_v19  ;;  %v458_v20 = vpop.f32.mrb[1].mxu0 }
 0x18a   : > { %466 = vst [vmem:[#allocation2 + $0x8] sm:$0xff] %v458_v20  ;;  %v460_v21 = vpop.f32.mrb[2].mxu0 }
 0x18b   : > { %467 = vst [vmem:[#allocation2 + $0x10] sm:$0xff] %v460_v21  ;;  %v462_v22 = vpop.f32.mrb[3].mxu0 }
 0x18c   : > { %468 = vst [vmem:[#allocation2 + $0x18] sm:$0xff] %v462_v22 }
 0x18d PF: > { %v1379_v23 = vld [vmem:[%s1915_s9 + $0x4] ss:$8 sps:$4 sm:$0xff]   ;;  %v1383_v25 = vld [vmem:[%s1915_s9] ss:$8 sps:$4 sm:$0xff]   ;;  %v1385_v27 = vld [vmem:[%s1915_s9 + $0x14] ss:$8 sps:$4 sm:$0xff]  }
 0x18e   : > { %v1381_v24 = vld [vmem:[%s1915_s9 + $0x104] ss:$8 sps:$4 sm:$0xff]   ;;  %885 = vmatprep.subr.bf16.mxu1 %v1379_v23  ;;  %v1384_v26 = vld [vmem:[%s1915_s9 + $0x100] ss:$8 sps:$4 sm:$0xff]   ;;  %v1387_v28 = vld [vmem:[%s1915_s9 + $0x114] ss:$8 sps:$4 sm:$0xff]  }
 0x18f   : > { %928 = vmatprep.subr.bf16.mxu0 %v1381_v24  ;;  %886 = vmatpush1.bf16.msra.mxu1 %v1383_v25  ;;  %v1389_v29 = vld [vmem:[%s1915_s9 + $0x10] ss:$8 sps:$4 sm:$0xff]   ;;  %v1391_v31 = vld [vmem:[%s1915_s9 + $0x24] ss:$8 sps:$4 sm:$0xff]   ;;  %v1395_v33 = vld [vmem:[%s1915_s9 + $0x20] ss:$8 sps:$4 sm:$0xff]  }
 0x190   : > { %929 = vmatpush1.bf16.msra.mxu0 %v1384_v26  ;;  %887 = vmatprep.subr.bf16.mxu1 %v1385_v27  ;;  %v1390_v30 = vld [vmem:[%s1915_s9 + $0x110] ss:$8 sps:$4 sm:$0xff]   ;;  %v1393_v32 = vld [vmem:[%s1915_s9 + $0x124] ss:$8 sps:$4 sm:$0xff]   ;;  %v1396_v34 = vld [vmem:[%s1915_s9 + $0x120] ss:$8 sps:$4 sm:$0xff]  }
 0x191   : > { %930 = vmatprep.subr.bf16.mxu0 %v1387_v28  ;;  %v1397_v35 = vld [vmem:[%s1915_s9 + $0x34] ss:$8 sps:$4 sm:$0xff]   ;;  %v1401_v37 = vld [vmem:[%s1915_s9 + $0x30] ss:$8 sps:$4 sm:$0xff]   ;;  %v1403_v39 = vld [vmem:[%s1915_s9 + $0x44] ss:$8 sps:$4 sm:$0xff]  }
 0x192   : > { %v1399_v36 = vld [vmem:[%s1915_s9 + $0x134] ss:$8 sps:$4 sm:$0xff]   ;;  %v1402_v38 = vld [vmem:[%s1915_s9 + $0x130] ss:$8 sps:$4 sm:$0xff]   ;;  %v1405_v40 = vld [vmem:[%s1915_s9 + $0x144] ss:$8 sps:$4 sm:$0xff]  }
 0x193   : > { %888 = vmatpush1.bf16.msra.mxu1 %v1389_v29  ;;  %v1407_v41 = vld [vmem:[%s1915_s9 + $0x40] ss:$8 sps:$4 sm:$0xff]   ;;  %v1409_v43 = vld [vmem:[%s1915_s9 + $0x54] ss:$8 sps:$4 sm:$0xff]   ;;  %v1413_v45 = vld [vmem:[%s1915_s9 + $0x50] ss:$8 sps:$4 sm:$0xff]  }
 0x194   : > { %931 = vmatpush1.bf16.msra.mxu0 %v1390_v30  ;;  %889 = vmatprep.subr.bf16.mxu1 %v1391_v31  ;;  %v1408_v42 = vld [vmem:[%s1915_s9 + $0x140] ss:$8 sps:$4 sm:$0xff]   ;;  %v1411_v44 = vld [vmem:[%s1915_s9 + $0x154] ss:$8 sps:$4 sm:$0xff]   ;;  %v1414_v46 = vld [vmem:[%s1915_s9 + $0x150] ss:$8 sps:$4 sm:$0xff]  }
 0x195   : > { %932 = vmatprep.subr.bf16.mxu0 %v1393_v32  ;;  %v1415_v47 = vld [vmem:[%s1915_s9 + $0x64] ss:$8 sps:$4 sm:$0xff]   ;;  %v1419_v49 = vld [vmem:[%s1915_s9 + $0x60] ss:$8 sps:$4 sm:$0xff]   ;;  %v1421_v51 = vld [vmem:[%s1915_s9 + $0x74] ss:$8 sps:$4 sm:$0xff]  }
 0x196   : > { %v1417_v48 = vld [vmem:[%s1915_s9 + $0x164] ss:$8 sps:$4 sm:$0xff]   ;;  %v1420_v50 = vld [vmem:[%s1915_s9 + $0x160] ss:$8 sps:$4 sm:$0xff]   ;;  %v1423_v52 = vld [vmem:[%s1915_s9 + $0x174] ss:$8 sps:$4 sm:$0xff]  }
 0x197   : > { %890 = vmatpush1.bf16.msra.mxu1 %v1395_v33  ;;  %v1425_v53 = vld [vmem:[%s1915_s9 + $0x70] ss:$8 sps:$4 sm:$0xff]   ;;  %v1427_v55 = vld [vmem:[%s1915_s9 + $0x84] ss:$8 sps:$4 sm:$0xff]   ;;  %v1431_v57 = vld [vmem:[%s1915_s9 + $0x80] ss:$8 sps:$4 sm:$0xff]  }
 0x198   : > { %933 = vmatpush1.bf16.msra.mxu0 %v1396_v34  ;;  %891 = vmatprep.subr.bf16.mxu1 %v1397_v35  ;;  %v1426_v54 = vld [vmem:[%s1915_s9 + $0x170] ss:$8 sps:$4 sm:$0xff]   ;;  %v1429_v56 = vld [vmem:[%s1915_s9 + $0x184] ss:$8 sps:$4 sm:$0xff]   ;;  %v1432_v58 = vld [vmem:[%s1915_s9 + $0x180] ss:$8 sps:$4 sm:$0xff]  }
 0x199   : > { %934 = vmatprep.subr.bf16.mxu0 %v1399_v36  ;;  %v1433_v59 = vld [vmem:[%s1915_s9 + $0x94] ss:$8 sps:$4 sm:$0xff]   ;;  %v1437_v61 = vld [vmem:[%s1915_s9 + $0x90] ss:$8 sps:$4 sm:$0xff]   ;;  %v1439_v63 = vld [vmem:[%s1915_s9 + $0xa4] ss:$8 sps:$4 sm:$0xff]  }
 0x19a   : > { %v1435_v60 = vld [vmem:[%s1915_s9 + $0x194] ss:$8 sps:$4 sm:$0xff]   ;;  %v1438_v62 = vld [vmem:[%s1915_s9 + $0x190] ss:$8 sps:$4 sm:$0xff]   ;;  %v1441_v0 = vld [vmem:[%s1915_s9 + $0x1a4] ss:$8 sps:$4 sm:$0xff]  }
 0x19b   : > { %892 = vmatpush1.bf16.msra.mxu1 %v1401_v37  ;;  %v1443_v1 = vld [vmem:[%s1915_s9 + $0xa0] ss:$8 sps:$4 sm:$0xff]   ;;  %v1445_v3 = vld [vmem:[%s1915_s9 + $0xb4] ss:$8 sps:$4 sm:$0xff]   ;;  %v1449_v5 = vld [vmem:[%s1915_s9 + $0xb0] ss:$8 sps:$4 sm:$0xff]  }
 0x19c   : > { %935 = vmatpush1.bf16.msra.mxu0 %v1402_v38  ;;  %893 = vmatprep.subr.bf16.mxu1 %v1403_v39  ;;  %v1444_v2 = vld [vmem:[%s1915_s9 + $0x1a0] ss:$8 sps:$4 sm:$0xff]   ;;  %v1447_v4 = vld [vmem:[%s1915_s9 + $0x1b4] ss:$8 sps:$4 sm:$0xff]   ;;  %v1450_v7 = vld [vmem:[%s1915_s9 + $0x1b0] ss:$8 sps:$4 sm:$0xff]  }
 0x19d   : > { %936 = vmatprep.subr.bf16.mxu0 %v1405_v40  ;;  %v1477_v6 = vld [vmem:[%s1909_s13 + $0x4] ss:$16 sps:$4 sm:$0xff]   ;;  %v1480_v10 = vld [vmem:[%s1909_s13 + $0xc] ss:$16 sps:$4 sm:$0xff]   ;;  %v1455_v11 = vld [vmem:[%s1915_s9 + $0xc0] ss:$8 sps:$4 sm:$0xff]  }
 0x19e   : > { %v1451_v8 = vld [vmem:[%s1915_s9 + $0xc4] ss:$8 sps:$4 sm:$0xff]   ;;  %917 = vmatprep.mubr.bf16.mxu1 %v1477_v6  ;;  %960 = vmatprep.mubr.bf16.mxu0 %v1480_v10  ;;  %v1456_v12 = vld [vmem:[%s1915_s9 + $0x1c0] ss:$8 sps:$4 sm:$0xff]   ;;  %v1457_v13 = vld [vmem:[%s1915_s9 + $0xd4] ss:$8 sps:$4 sm:$0xff]  }
 0x19f   : > { %894 = vmatpush1.bf16.msra.mxu1 %v1407_v41  ;;  %v1453_v9 = vld [vmem:[%s1915_s9 + $0x1c4] ss:$8 sps:$4 sm:$0xff]   ;;  %v1459_v14 = vld [vmem:[%s1915_s9 + $0x1d4] ss:$8 sps:$4 sm:$0xff]   ;;  %v1461_v15 = vld [vmem:[%s1915_s9 + $0xd0] ss:$8 sps:$4 sm:$0xff]  }
 0x1a0   : > { %937 = vmatpush1.bf16.msra.mxu0 %v1408_v42  ;;  %895 = vmatprep.subr.bf16.mxu1 %v1409_v43  ;;  %v1462_v16 = vld [vmem:[%s1915_s9 + $0x1d0] ss:$8 sps:$4 sm:$0xff]   ;;  %v1463_v17 = vld [vmem:[%s1915_s9 + $0xe4] ss:$8 sps:$4 sm:$0xff]   ;;  %v1467_v19 = vld [vmem:[%s1915_s9 + $0xe0] ss:$8 sps:$4 sm:$0xff]  }
 0x1a1   : > { %938 = vmatprep.subr.bf16.mxu0 %v1411_v44  ;;  %v1465_v18 = vld [vmem:[%s1915_s9 + $0x1e4] ss:$8 sps:$4 sm:$0xff]   ;;  %v1468_v20 = vld [vmem:[%s1915_s9 + $0x1e0] ss:$8 sps:$4 sm:$0xff]   ;;  %v1469_v21 = vld [vmem:[%s1915_s9 + $0xf4] ss:$8 sps:$4 sm:$0xff]  }
 0x1a2   : > { %v1471_v22 = vld [vmem:[%s1915_s9 + $0x1f4] ss:$8 sps:$4 sm:$0xff]   ;;  %v1473_v23 = vld [vmem:[%s1915_s9 + $0xf0] ss:$8 sps:$4 sm:$0xff]   ;;  %v474_v32 = vld [vmem:[#allocation3 + $0x8] sm:$0xff]  ;;  %p1252_p1 = scmp.ne.s32.totalorder %s1651_s18, 1 }
 0x1a3   : > { %896 = vmatpush1.bf16.msra.mxu1 %v1413_v45  ;;  %v1474_v24 = vld [vmem:[%s1915_s9 + $0x1f0] ss:$8 sps:$4 sm:$0xff]   ;;  %v475_v36 = vld [vmem:[#allocation3 + $0x10] sm:$0xff]  ;;  %vm1029_vm0 = vcmask (!%p1252_p1), 7168  }
 0x1a4   : > { %939 = vmatpush1.bf16.msra.mxu0 %v1414_v46  ;;  %897 = vmatprep.subr.bf16.mxu1 %v1415_v47  ;;  %v1475_v25 = vld [vmem:[%s1909_s13] ss:$16 sps:$4 sm:$0xff]   ;;  %v1478_v26 = vld [vmem:[%s1909_s13 + $0x8] ss:$16 sps:$4 sm:$0xff]  }
 0x1a5   : > { %940 = vmatprep.subr.bf16.mxu0 %v1417_v48  ;;  %v473_v28 = vld [vmem:[#allocation3] sm:$0xff]  ;;  %v476_v41 = vld [vmem:[#allocation3 + $0x18] sm:$0xff] }
 0x1a7   : > { %898 = vmatpush1.bf16.msra.mxu1 %v1419_v49  ;;  %v983_v49 = vld [vmem:[#allocation2] sm:$0xff] (!%p1252_p1) }
 0x1a8   : > { %941 = vmatpush1.bf16.msra.mxu0 %v1420_v50  ;;  %899 = vmatprep.subr.bf16.mxu1 %v1421_v51 }
 0x1a9   : > { %942 = vmatprep.subr.bf16.mxu0 %v1423_v52  ;;  %v984_v52 = vld [vmem:[#allocation2 + $0x8] sm:$0xff] (!%p1252_p1) }
 0x1ab   : > { %900 = vmatpush1.bf16.msra.mxu1 %v1425_v53  ;;  %v1001_v53 = vmul.f32 (!%p1252_p1), %v983_v49, %v983_v49 }
 0x1ac   : > { %943 = vmatpush1.bf16.msra.mxu0 %v1426_v54  ;;  %901 = vmatprep.subr.bf16.mxu1 %v1427_v55 }
 0x1ad   : > { %944 = vmatprep.subr.bf16.mxu0 %v1429_v56  ;;  %v1002_v56 = vmul.f32 (!%p1252_p1), %v984_v52, %v984_v52 }
 0x1af   : > { %902 = vmatpush1.bf16.msra.mxu1 %v1431_v57 }
 0x1b0   : > { %945 = vmatpush1.bf16.msra.mxu0 %v1432_v58  ;;  %903 = vmatprep.subr.bf16.mxu1 %v1433_v59  ;;  %v985_v59 = vld [vmem:[#allocation2 + $0x10] sm:$0xff] (!%p1252_p1) }
 0x1b1   : > { %946 = vmatprep.subr.bf16.mxu0 %v1435_v60  ;;  %v986_v60 = vld [vmem:[#allocation2 + $0x18] sm:$0xff] (!%p1252_p1) }
 0x1b3   : > { %904 = vmatpush1.bf16.msra.mxu1 %v1437_v61 }
 0x1b4   : > { %947 = vmatpush1.bf16.msra.mxu0 %v1438_v62  ;;  %905 = vmatprep.subr.bf16.mxu1 %v1439_v63  ;;  %v1003_v62 = vmul.f32 (!%p1252_p1), %v985_v59, %v985_v59  ;;  %v1004_v63 = vmul.f32 (!%p1252_p1), %v986_v60, %v986_v60 }
 0x1b5   : > { %948 = vmatprep.subr.bf16.mxu0 %v1441_v0  ;;  %v1005_v0 = vadd.f32 (!%p1252_p1), %v1002_v56, %v1001_v53 }
 0x1b7   : > { %906 = vmatpush1.bf16.msra.mxu1 %v1443_v1  ;;  %1006 = vadd.xlane.f32.xlu0 (!%p1252_p1), %v1005_v0 }
 0x1b8   : > { %949 = vmatpush1.bf16.msra.mxu0 %v1444_v2  ;;  %907 = vmatprep.subr.bf16.mxu1 %v1445_v3 }
 0x1b9   : > { %950 = vmatprep.subr.bf16.mxu0 %v1447_v4  ;;  %v1008_v4 = vadd.f32 (!%p1252_p1), %v1004_v63, %v1003_v62 }
 0x1bb   : > { %908 = vmatpush1.bf16.msra.mxu1 %v1449_v5  ;;  %1009 = vadd.xlane.f32.xlu0 (!%p1252_p1), %v1008_v4 }
 0x1bc   : > { %951 = vmatpush1.bf16.msra.mxu0 %v1450_v7  ;;  %909 = vmatprep.subr.bf16.mxu1 %v1451_v8 }
 0x1bd   : > { %952 = vmatprep.subr.bf16.mxu0 %v1453_v9 }
 0x1bf   : > { %910 = vmatpush1.bf16.msra.mxu1 %v1455_v11 }
 0x1c0   : > { %953 = vmatpush1.bf16.msra.mxu0 %v1456_v12  ;;  %911 = vmatprep.subr.bf16.mxu1 %v1457_v13 }
 0x1c1   : > { %954 = vmatprep.subr.bf16.mxu0 %v1459_v14 }
 0x1c3   : > { %912 = vmatpush1.bf16.msra.mxu1 %v1461_v15 }
 0x1c4   : > { %955 = vmatpush1.bf16.msra.mxu0 %v1462_v16  ;;  %913 = vmatprep.subr.bf16.mxu1 %v1463_v17 }
 0x1c5   : > { %956 = vmatprep.subr.bf16.mxu0 %v1465_v18 }
 0x1c7   : > { %914 = vmatpush1.bf16.msra.mxu1 %v1467_v19 }
 0x1c8   : > { %957 = vmatpush1.bf16.msra.mxu0 %v1468_v20  ;;  %915 = vmatprep.subr.bf16.mxu1 %v1469_v21 }
 0x1c9   : > { %958 = vmatprep.subr.bf16.mxu0 %v1471_v22 }
 0x1cb   : > { %916 = vmatpush1.bf16.msra.mxu1 %v1473_v23 }
 0x1cc   : > { %959 = vmatpush1.bf16.msra.mxu0 %v1474_v24 }
 0x1ce   : > { %918 = vmatmul.mubr.bf16.vlgmr.msra.gmra.mrb[0].mxu1 %v1475_v25 }
 0x1cf   : > { %961 = vmatmul.mubr.bf16.vlgmr.msra.gmra.mrb[0].mxu0 %v1478_v26 }
 0x244   : > { %v1007_v10 = vpop.xlane.xlu0 (!%p1252_p1), %1006 }
 0x248   : > { %v1010_v14 = vpop.xlane.xlu0 (!%p1252_p1), %1009 }
 0x2a1   : > { %v919_v27 = vpop.f32.mrb[0].mxu1 }
 0x2a2   : > { %v962_v29 = vpop.f32.mrb[0].mxu0  ;;  %v921_v31 = vpop.f32.mrb[1].mxu1 }
 0x2a3   : > { %v963_v30 = vadd.f32 %v962_v29, %v919_v27  ;;  %v964_v33 = vpop.f32.mrb[1].mxu0  ;;  %v923_v35 = vpop.f32.mrb[2].mxu1 }
 0x2a4   : > { %v965_v34 = vadd.f32 %v964_v33, %v921_v31  ;;  %v966_v37 = vpop.f32.mrb[2].mxu0  ;;  %v925_v40 = vpop.f32.mrb[3].mxu1  ;;  %982 = sbr.rel (%p1252_p1) target bundleno = 856 (0x358), region = 60 }
 0x2a5   : > { %v971_v38 = vadd.f32 %v963_v30, %v473_v28  ;;  %v967_v39 = vadd.f32 %v966_v37, %v923_v35  ;;  %v968_v42 = vpop.f32.mrb[3].mxu0 }
 0x2a6   : > { %v972_v43 = vadd.f32 %v965_v34, %v474_v32  ;;  %v969_v44 = vadd.f32 %v968_v42, %v925_v40 }
 0x2a7   : > { %975 = vst [vmem:[#allocation3] sm:$0xff] %v971_v38  ;;  %v973_v45 = vadd.f32 %v967_v39, %v475_v36 }
 0x2a8   : > { %976 = vst [vmem:[#allocation3 + $0x8] sm:$0xff] %v972_v43  ;;  %v974_v46 = vadd.f32 %v969_v44, %v476_v41 }
 0x2a9   : > { %977 = vst [vmem:[#allocation3 + $0x10] sm:$0xff] %v973_v45 }
 0x2aa   : > { %978 = vst [vmem:[#allocation3 + $0x18] sm:$0xff] %v974_v46 }
 0x2ae   : > { %v987_v47 = vld [vmem:[#allocation3] sm:$0xff] }
 0x2af   : > { %v988_v48 = vld [vmem:[#allocation3 + $0x8] sm:$0xff]  ;;  %v1011_v50 = vmul.f32 %v987_v47, %v987_v47  ;;  %v991_v5 = vmul.f32 %v987_v47, %v983_v49 }
 0x2b0   : > { %v1012_v51 = vmul.f32 %v988_v48, %v988_v48  ;;  %v989_v54 = vld [vmem:[#allocation3 + $0x10] sm:$0xff]  ;;  %v992_v6 = vmul.f32 %v988_v48, %v984_v52 }
 0x2b1   : > { %v990_v55 = vld [vmem:[#allocation3 + $0x18] sm:$0xff]  ;;  %v1013_v57 = vmul.f32 %v989_v54, %v989_v54  ;;  %v993_v2 = vmul.f32 %v989_v54, %v985_v59 }
 0x2b2   : > { %v1014_v58 = vmul.f32 %v990_v55, %v990_v55  ;;  %v1015_v61 = vadd.f32 %v1012_v51, %v1011_v50  ;;  %v994_v3 = vmul.f32 %v990_v55, %v986_v60  ;;  %v995_v8 = vadd.f32 %v992_v6, %v991_v5 }
 0x2b4   : > { %1016 = vadd.xlane.f32.xlu1 %v1015_v61  ;;  %v1018_v1 = vadd.f32 %v1014_v58, %v1013_v57  ;;  %v998_v7 = vadd.f32 %v994_v3, %v993_v2  ;;  %996 = vadd.xlane.f32.xlu0 %v995_v8 }
 0x2b8   : > { %1019 = vadd.xlane.f32.xlu1 %v1018_v1 }
 0x2bc   : > { %999 = vadd.xlane.f32.xlu1 %v998_v7 }
 0x341   : > { %v1017_v9 = vpop.xlane.xlu1 %1016  ;;  %v997_v17 = vpop.xlane.xlu0 %996 }
 0x342   : > { %v1021_v11 = vmul.f32 %v1017_v9, %v1007_v10 }
 0x344   : > { %v1023_v12 = vmax.f32 %v1021_v11, 1e-16 }
 0x345   : > { %v1020_v13 = vpop.xlane.xlu1 %1019 }
 0x346   : > { %1481 = vrsqrt.f32 %v1023_v12  ;;  %v1022_v15 = vmul.f32 %v1020_v13, %v1010_v14 }
 0x348   : > { %v1024_v16 = vmax.f32 %v1022_v15, 1e-16 }
 0x349   : > { %v1000_v20 = vpop.xlane.xlu1 %999 }
 0x34a   : > { %1483 = vrsqrt.f32 %v1024_v16 }
 0x350   : > { %v1482_v18 = vpop.eup %1481 }
 0x351   : > { %v1027_v19 = vmul.f32 %v1482_v18, %v997_v17 }
 0x353   : > { %1030 = vst.msk [vmem:[%s2015_s4] sm:$0xff] %vm1029_vm0, %v1027_v19 }
 0x354   : > { %v1484_v21 = vpop.eup %1483 }
 0x355   : > { %v1028_v22 = vmul.f32 %v1484_v21, %v1000_v20 }
 0x357   : > { %1031 = vst.msk [vmem:[%s2015_s4 + $0x8] sm:$0xff] %vm1029_vm0, %v1028_v22 }
 0x358 PF: > { %s16_s20 = sadd.s32 1, %s1659_s20   ;;  %s2046_s10 = sld [smem:[#allocation13_spill]] }
 0x359   : > { %p13_p4 = scmp.ge.s32.totalorder %s16_s20, 4   ;;  %s2047_s15 = smov %s1643_s16 }
 0x35a   : > { %s2048_s16 = smov %s1647_s17  ;;  %s2049_s17 = smov %s1804_s14 }
 0x35b   : > { %s2050_s18 = smov %s1655_s19  ;;  %15 = sbr.rel (!%p13_p4) target bundleno = 7 (0x7), region = 103 }
 0x35e   : > { %s2051_s19 = smov %s2046_s10 }
 0x362   :  { %1054 = vsyncpa [#allocation5], 1 }
 0x363   :  { %1056 = vsyncpa [#allocation5 + $0x1], 1 }
 0x364   :  { %1057 = vsyncpa [#allocation7], 1 }

</bundles_post_ra>
